<compile_context>
chip_gen: v6e
topology: v6e:2x2x1
jax: 0.10.0
libtpu: 0.0.40
codegen_flags: <defaults>
</compile_context>

<pallas_src>
import functools

import jax
import jax.numpy as jnp
from jax.experimental import pallas as pl
from jax.experimental.pallas import tpu as pltpu


def _vmem_capacity_bytes():
    try:
        return int(pltpu.get_tpu_info().vmem_capacity_bytes)
    except Exception:
        return 64 * (1 << 20)   # conservative fallback (v7x per-TensorCore VMEM)


def _pick_rows_per_block(B, vbs, input_dim, feat_bytes=2, target_block_bytes=4 << 20,
                         max_vb_per_block=8, min_blocks=4):
    """Rows per grid step: a multiple of vbs that coalesces several virtual
    batches (large feat DMAs amortize the ~0.35us/step pipeline overhead),
    keeps the static in-kernel segment unroll bounded (<= max_vb_per_block),
    keeps >= min_blocks grid steps (>= 2 per v7x TensorCore) and tiles the
    batch evenly."""
    per_row = max(1, input_dim * feat_bytes)
    # Target a ~2-8 MiB feat block, but never fewer than 4 nor more than
    # max_vb_per_block virtual batches per block.
    rows = min(max(target_block_bytes // per_row, 4 * vbs), max_vb_per_block * vbs)
    rows = max(vbs, (rows // vbs) * vbs)
    rows = min(rows, B)
    if B >= min_blocks * vbs:
        rows = min(rows, max(vbs, (B // min_blocks) // vbs * vbs))
    rows = max(vbs, rows)
    while B % rows != 0:                              # must tile the batch evenly
        rows -= vbs
    rows = max(vbs, rows)
    # (8,128) lane-density constraint on the (G, rows) blocks.
    if rows != B and rows % 128 != 0:
        rows = B
    return rows


def _pick_k_block(input_dim, rows, feat_bytes, vmem_budget):
    """Split the contraction (input_dim) axis only when the double-buffered
    full-K feat block would eat too much of the VMEM budget; the K-split keeps
    the row block large (HBM-efficient) instead of shrinking it."""
    full = 2 * rows * input_dim * feat_bytes
    if full <= vmem_budget // 3 or input_dim % 128 != 0:
        # TODO(synk): pad input_dim to a multiple of 128 to enable the K-split
        # for very large, unaligned feature dims.
        return input_dim
    tk = ((vmem_budget // 3) // (2 * rows * feat_bytes)) // 128 * 128
    tk = max(128, min(tk, input_dim))
    while input_dim % tk != 0:
        tk -= 128
    return max(128, tk)


def _attentive_transformer_kernel(priors_t_ref, feat_ref, w_ref, gamma_ref, beta_ref,
                                  out_t_ref, acc_ref, *, eps, n_vb, vbs, group_dim, n_k):
    kk = pl.program_id(1)

    # ---- fc (no bias), transposed NT form over this K chunk:
    #      (G, tk) . (R, tk)^T -> (G, R).  Rows stay lane-dense; the big feat
    #      block is never transposed in-kernel.
    # TODO(synk): verify via pl.lower_as_mlir / bundle dump that Mosaic does not
    # materialize a relayout of the feat block for this contraction; if it does,
    # pre-transpose the tiny resident W instead.
    partial = jax.lax.dot_general(
        w_ref[...], feat_ref[...],
        dimension_numbers=(((1,), (1,)), ((), ())),
        preferred_element_type=jnp.float32)                       # (G, R) f32

    if n_k == 1:
        acc_ref[...] = partial
    else:
        @pl.when(kk == 0)
        def _init():
            acc_ref[...] = jnp.zeros_like(acc_ref)
        acc_ref[...] += partial

    def _segment(lo):
        x = acc_ref[:, lo:lo + vbs]                               # (G, vbs) f32, static lane slice

        # ---- GhostBatchNorm (training mode, biased stats), fused affine ------
        inv_n = 1.0 / vbs
        mean = jnp.sum(x, axis=1, keepdims=True) * inv_n          # (G, 1)
        msq = jnp.sum(x * x, axis=1, keepdims=True) * inv_n
        var = jnp.maximum(msq - mean * mean, 0.0)
        scale = gamma_ref[...] * jax.lax.rsqrt(var + eps)         # (G, 1); rsqrt on EUP
        shift = beta_ref[...] - mean * scale                      # (G, 1)

        # ---- BN affine + priors multiply (3 full-tile VALU ops) --------------
        z = (x * scale + shift) * priors_t_ref[:, lo:lo + vbs]

        # ---- sparsemax over the group axis (sublane axis 0) ------------------
        # Sort-free comparison formulation, equivalent to the sorted reference
        # (including ties); tau uses exact division so rows sum to 1 at 1e-5.
        z = z - jnp.max(z, axis=0, keepdims=True)
        cnt = jnp.zeros_like(z)                                   # cnt_j  = #{i : z_i >= z_j}
        ssum = jnp.zeros_like(z)                                  # ssum_j = sum_{i: z_i >= z_j} z_i
        # TODO(synk): for group_dim > ~32 switch to an XLU formulation (sublane
        # sort / pltpu.roll cumulative sums) — this compare loop is O(G^2) on
        # the VALU slot.
        for g in range(group_dim):                                # static unroll (small G)
            zg = z[g:g + 1, :]                                    # sublane-row broadcast
            ge = (zg >= z).astype(jnp.float32)
            cnt = cnt + ge
            ssum = ssum + ge * zg
        is_sup = ((1.0 + cnt * z) > ssum).astype(jnp.float32)
        k_sup = jnp.sum(is_sup, axis=0, keepdims=True)
        s_sup = jnp.sum(z * is_sup, axis=0, keepdims=True)
        tau = (s_sup - 1.0) / k_sup
        out_t_ref[:, lo:lo + vbs] = jnp.maximum(z - tau, 0.0)

    def _epilogue():
        # Static unroll; n_vb is capped at 8 by the wrapper.
        # TODO(synk): for >8 virtual batches per block convert this into a
        # lax.fori_loop over dynamic lane slices of acc_ref.
        for v in range(n_vb):
            _segment(v * vbs)

    if n_k == 1:
        _epilogue()
    else:
        pl.when(kk == n_k - 1)(_epilogue)


def attentive_transformer(priors, processed_feat, w, gamma, beta,
                          virtual_batch_size=128, eps=1e-5,
                          rows_per_block=None, k_block=None,
                          matmul_dtype=jnp.bfloat16, transposed_io=False):
    """priors: (B, G) [or (G, B) if transposed_io]; processed_feat: (B, K);
    w: (G, K) — natural nn.Linear(K, G, bias=False) weight.  Returns (B, G)
    [or (G, B) if transposed_io]."""
    B, input_dim = processed_feat.shape
    group_dim = w.shape[0]
    vbs = min(virtual_batch_size, B)
    # TODO(synk): torch.chunk allows a ragged last virtual batch with its own
    # statistics when B % virtual_batch_size != 0, and eval-mode BN uses running
    # stats; only the even, training-mode case is supported.
    assert B % vbs == 0, "batch must be divisible by the virtual batch size"

    mm_bytes = jnp.dtype(matmul_dtype).itemsize
    MiB = 1 << 20
    # Generation-aware VMEM clamp: ~48 MiB on v7x (64 MiB/TC), ~96 MiB on v5e/v6e.
    cap = max(32 * MiB, (_vmem_capacity_bytes() * 3) // 4)

    if rows_per_block is None:
        rows_per_block = _pick_rows_per_block(B, vbs, input_dim, feat_bytes=mm_bytes)
    assert B % rows_per_block == 0 and rows_per_block % vbs == 0
    n_vb = rows_per_block // vbs
    n_blocks = B // rows_per_block

    if k_block is None:
        k_block = _pick_k_block(input_dim, rows_per_block, mm_bytes, cap)
    assert input_dim % k_block == 0
    n_k = input_dim // k_block
    if n_k > 1 and n_vb > 8:
        # TODO(synk): K-split combined with >8 virtual batches per block needs a
        # fori_loop epilogue over dynamic lane slices; fall back to full-K.
        k_block, n_k = input_dim, 1

    # Layout plumbing for the tiny (B, G) streams.  Default (module) layout
    # transposes priors / output in the wrapper (B*G*4-byte round trips);
    # transposed_io=True keeps the lane-dense (G, B) layout end-to-end so a
    # downstream consumer can fuse the transpose away.
    priors_t = (priors if transposed_io else priors.T).astype(jnp.float32)   # (G, B)
    gamma_c = gamma.reshape(group_dim, 1).astype(jnp.float32)
    beta_c = beta.reshape(group_dim, 1).astype(jnp.float32)
    # bf16 feeds the MXU natively and halves the dominant feat HBM stream; all
    # post-matmul math stays f32.  (In production the producer should emit bf16
    # directly so this cast fuses away instead of being a standalone convert.)
    feat_mm = processed_feat.astype(matmul_dtype)
    w_mm = w.astype(matmul_dtype)

    # VMEM budget: double-buffered streamed blocks + resident params +
    # accumulator scratch + headroom for epilogue temporaries.
    feat_blk = rows_per_block * k_block * mm_bytes
    w_blk = group_dim * k_block * mm_bytes
    lane_blk = rows_per_block * group_dim * 4
    est = (2 * feat_blk + 2 * w_blk          # streamed feat + W blocks
           + 4 * lane_blk                    # priors^T + out^T (double-buffered)
           + lane_blk                        # f32 accumulator scratch
           + 16 * group_dim * vbs * 4)       # epilogue temporaries
    vmem_limit = int(min(cap, max(32 * MiB, 2 * est)))

    kernel = functools.partial(_attentive_transformer_kernel, eps=eps, n_vb=n_vb,
                               vbs=vbs, group_dim=group_dim, n_k=n_k)

    out_t = pl.pallas_call(
        kernel,
        out_shape=jax.ShapeDtypeStruct((group_dim, B), jnp.float32),
        grid_spec=pltpu.PrefetchScalarGridSpec(
            num_scalar_prefetch=0,
            grid=(n_blocks, n_k),
            in_specs=[
                pl.BlockSpec((group_dim, rows_per_block), lambda c, kk: (0, c)),  # priors^T (lane-dense)
                # TODO(synk): if profiling shows exposed feat DMA after bf16, add
                # pipeline_mode=pl.Buffered(3) here (not on v7x at large K —
                # prefer the K-split there).
                pl.BlockSpec((rows_per_block, k_block), lambda c, kk: (c, kk)),   # processed_feat (bf16)
                pl.BlockSpec((group_dim, k_block), lambda c, kk: (0, kk)),        # fc weight (bf16)
                pl.BlockSpec((group_dim, 1), lambda c, kk: (0, 0)),               # BN gamma (resident)
                pl.BlockSpec((group_dim, 1), lambda c, kk: (0, 0)),               # BN beta  (resident)
            ],
            out_specs=pl.BlockSpec((group_dim, rows_per_block), lambda c, kk: (0, c)),  # out^T (lane-dense)
            scratch_shapes=[pltpu.VMEM((group_dim, rows_per_block), jnp.float32)],
        ),
        compiler_params=pltpu.CompilerParams(
            dimension_semantics=("parallel", "arbitrary"),
            vmem_limit_bytes=vmem_limit,
        ),
    )(priors_t, feat_mm, w_mm, gamma_c, beta_c)
    # TODO(synk): for many TabNet steps / heads, stack their weights along G and
    # run them in one kernel to raise MXU utilization (padding-, not FLOP-bound).

    return out_t if transposed_io else out_t.T                    # (B, group_dim)


def _reference(priors, feat, w, gamma, beta, vbs, eps=1e-5, matmul_dtype=jnp.bfloat16):
    """Pure-JAX mirror of the PyTorch forward (sorted sparsemax).  The matmul is
    done in the same dtype the kernel feeds the MXU so tolerances stay tight;
    vs. a pure-f32 torch forward expect ~1e-2-level differences from the cast."""
    B = feat.shape[0]
    x = jnp.dot(feat.astype(matmul_dtype), w.astype(matmul_dtype).T,
                preferred_element_type=jnp.float32)
    chunks = []
    for st in range(0, B, vbs):
        xc = x[st:st + vbs]
        m = xc.mean(0, keepdims=True)
        v = ((xc - m) ** 2).mean(0, keepdims=True)
        chunks.append((xc - m) / jnp.sqrt(v + eps) * gamma + beta)
    x = jnp.concatenate(chunks, 0)
    z = x * priors
    z = z - z.max(-1, keepdims=True)
    zs = jnp.sort(z, axis=-1)[:, ::-1]
    r = jnp.arange(1, z.shape[-1] + 1, dtype=z.dtype)[None, :]
    cs = jnp.cumsum(zs, axis=-1)
    is_gt = (1.0 + r * zs > cs).astype(z.dtype)
    k = jnp.max(is_gt * r, axis=-1, keepdims=True)
    tau = (jnp.sum(is_gt * zs, -1, keepdims=True) - 1.0) / k
    return jnp.maximum(z - tau, 0.0)


if __name__ == "__main__":
    def _run_case(name, B, input_dim, group_dim, vbs, seed=0, **kw):
        key = jax.random.PRNGKey(seed)
        k1, k2, k3, k4, k5 = jax.random.split(key, 5)
        feat = jax.random.normal(k1, (B, input_dim), jnp.float32)
        # TabNet priors are positive masks; use positive deterministic values.
        priors = jax.nn.softplus(jax.random.normal(k2, (B, group_dim), jnp.float32))
        bound = 1.0 / (input_dim ** 0.5)
        w = jax.random.uniform(k3, (group_dim, input_dim), jnp.float32, -bound, bound)
        gamma = 1.0 + 0.1 * jax.random.normal(k4, (group_dim,), jnp.float32)
        beta = 0.05 * jax.random.normal(k5, (group_dim,), jnp.float32)

        out = attentive_transformer(priors, feat, w, gamma, beta,
                                    virtual_batch_size=vbs, **kw)
        out = jax.block_until_ready(out)

        ref = _reference(priors, feat, w, gamma, beta, vbs)
        assert out.shape == (B, group_dim), name
        assert jnp.allclose(out, ref, atol=3e-4, rtol=3e-4), f"{name}: kernel != reference"
        assert jnp.allclose(out.sum(-1), 1.0, atol=1e-5), f"{name}: sparsemax rows must sum to 1"

    # Base: 4 virtual batches of 128 rows -> 4 grid steps (>= 2 per v7x core).
    _run_case("base", B=512, input_dim=64, group_dim=8, vbs=128)
    # K-split path: inner "arbitrary" grid axis over input_dim, VMEM accumulator.
    _run_case("ksplit", B=512, input_dim=256, group_dim=8, vbs=128, seed=1, k_block=128)
    # Coalesced row block: 8 virtual batches per grid step (max static unroll).
    _run_case("wide", B=2048, input_dim=64, group_dim=8, vbs=128, seed=2, rows_per_block=1024)

    print("KERNEL_OK")
</pallas_src>

<mosaic_0001>
module attributes {stable_mosaic.version = 11 : i64} {
  func.func @_attentive_transformer_kernel(%arg0: i32, %arg1: i32, %arg2: memref<8x128xf32, #tpu.memory_space<vmem>>, %arg3: memref<128x64xbf16, #tpu.memory_space<vmem>>, %arg4: memref<8x64xbf16, #tpu.memory_space<vmem>>, %arg5: memref<8x1xf32, #tpu.memory_space<vmem>>, %arg6: memref<8x1xf32, #tpu.memory_space<vmem>>, %arg7: memref<8x128xf32, #tpu.memory_space<vmem>>, %arg8: memref<8x128xf32, #tpu.memory_space<vmem>>) attributes {dimension_semantics = [#tpu.dimension_semantics<parallel>, #tpu.dimension_semantics<arbitrary>], iteration_bounds = array<i64: 4, 1>, scalar_prefetch = 0 : i64, scratch_operands = 1 : i64, tpu.core_type = #tpu.core_type<tc>, window_params = [{transform_indices = @transform_0, window_bounds = array<i64: 8, 128>}, {transform_indices = @transform_1, window_bounds = array<i64: 128, 64>}, {transform_indices = @transform_2, window_bounds = array<i64: 8, 64>}, {pipeline_mode = #tpu.pipeline_mode<synchronous>, transform_indices = @transform_3, window_bounds = array<i64: 8, 1>}, {pipeline_mode = #tpu.pipeline_mode<synchronous>, transform_indices = @transform_4, window_bounds = array<i64: 8, 1>}, {transform_indices = @transform_5, window_bounds = array<i64: 8, 128>}]} {
    %c0 = arith.constant 0 : index
    %c0_0 = arith.constant 0 : index
    %0 = vector.load %arg4[%c0, %c0_0] : memref<8x64xbf16, #tpu.memory_space<vmem>>, vector<8x64xbf16>
    %c0_1 = arith.constant 0 : index
    %c0_2 = arith.constant 0 : index
    %1 = vector.load %arg3[%c0_1, %c0_2] : memref<128x64xbf16, #tpu.memory_space<vmem>>, vector<128x64xbf16>
    %cst = arith.constant dense<0.000000e+00> : vector<8x128xf32>
    %2 = tpu.matmul %0, %1, %cst {dimension_numbers = #tpu.dot_dimension_numbers<[1], [1], [0], [0], [0, 0, 1, 0], [], []>} : vector<8x64xbf16>, vector<128x64xbf16>, vector<8x128xf32> -> vector<8x128xf32>
    %c0_3 = arith.constant 0 : index
    %c0_4 = arith.constant 0 : index
    %3 = vector.load %arg8[%c0_3, %c0_4] : memref<8x128xf32, #tpu.memory_space<vmem>>, vector<8x128xf32>
    tpu.vector_store %arg8[%c0_3, %c0_4], %2 {strides = array<i32>} : memref<8x128xf32, #tpu.memory_space<vmem>>, vector<8x128xf32>,
    %c0_5 = arith.constant 0 : index
    %c0_6 = arith.constant 0 : index
    %4 = vector.load %arg8[%c0_5, %c0_6] : memref<8x128xf32, #tpu.memory_space<vmem>>, vector<8x128xf32>
    %cst_7 = arith.constant dense<0.000000e+00> : vector<8xf32>
    %5 = vector.multi_reduction <add>, %4, %cst_7 [1] : vector<8x128xf32> to vector<8xf32>
    %6 = vector.shape_cast %5 : vector<8xf32> to vector<8x1xf32>
    %cst_8 = arith.constant 7.812500e-03 : f32
    %7 = vector.broadcast %cst_8 : f32 to vector<8x1xf32>
    %8 = arith.mulf %6, %7 : vector<8x1xf32>
    %9 = arith.mulf %4, %4 : vector<8x128xf32>
    %cst_9 = arith.constant dense<0.000000e+00> : vector<8xf32>
    %10 = vector.multi_reduction <add>, %9, %cst_9 [1] : vector<8x128xf32> to vector<8xf32>
    %11 = vector.shape_cast %10 : vector<8xf32> to vector<8x1xf32>
    %cst_10 = arith.constant 7.812500e-03 : f32
    %12 = vector.broadcast %cst_10 : f32 to vector<8x1xf32>
    %13 = arith.mulf %11, %12 : vector<8x1xf32>
    %14 = arith.mulf %8, %8 : vector<8x1xf32>
    %15 = arith.subf %13, %14 : vector<8x1xf32>
    %cst_11 = arith.constant 0.000000e+00 : f32
    %16 = vector.broadcast %cst_11 : f32 to vector<8x1xf32>
    %17 = arith.maximumf %15, %16 : vector<8x1xf32>
    %c0_12 = arith.constant 0 : index
    %c0_13 = arith.constant 0 : index
    %18 = vector.load %arg5[%c0_12, %c0_13] : memref<8x1xf32, #tpu.memory_space<vmem>>, vector<8x1xf32>
    %cst_14 = arith.constant 9.99999974E-6 : f32
    %19 = vector.broadcast %cst_14 : f32 to vector<8x1xf32>
    %20 = arith.addf %17, %19 : vector<8x1xf32>
    %21 = math.rsqrt %20 : vector<8x1xf32>
    %22 = arith.mulf %18, %21 : vector<8x1xf32>
    %c0_15 = arith.constant 0 : index
    %c0_16 = arith.constant 0 : index
    %23 = vector.load %arg6[%c0_15, %c0_16] : memref<8x1xf32, #tpu.memory_space<vmem>>, vector<8x1xf32>
    %24 = arith.mulf %8, %22 : vector<8x1xf32>
    %25 = arith.subf %23, %24 : vector<8x1xf32>
    %26 = vector.broadcast %22 : vector<8x1xf32> to vector<8x128xf32>
    %27 = arith.mulf %4, %26 : vector<8x128xf32>
    %28 = vector.broadcast %25 : vector<8x1xf32> to vector<8x128xf32>
    %29 = arith.addf %27, %28 : vector<8x128xf32>
    %c0_17 = arith.constant 0 : index
    %c0_18 = arith.constant 0 : index
    %30 = vector.load %arg2[%c0_17, %c0_18] : memref<8x128xf32, #tpu.memory_space<vmem>>, vector<8x128xf32>
    %31 = arith.mulf %29, %30 : vector<8x128xf32>
    %cst_19 = arith.constant dense<0xFF800000> : vector<128xf32>
    %32 = vector.multi_reduction <maximumf>, %31, %cst_19 [0] : vector<8x128xf32> to vector<128xf32>
    %33 = vector.shape_cast %32 : vector<128xf32> to vector<1x128xf32>
    %34 = vector.broadcast %33 : vector<1x128xf32> to vector<8x128xf32>
    %35 = arith.subf %31, %34 : vector<8x128xf32>
    %cst_20 = arith.constant 0.000000e+00 : f32
    %36 = vector.broadcast %cst_20 : f32 to vector<8x128xf32>
    %cst_21 = arith.constant 0.000000e+00 : f32
    %37 = vector.broadcast %cst_21 : f32 to vector<8x128xf32>
    %38 = vector.extract_strided_slice %35 {offsets = [0, 0], sizes = [1, 128], strides = [1, 1]} : vector<8x128xf32> to vector<1x128xf32>
    %39 = vector.broadcast %38 : vector<1x128xf32> to vector<8x128xf32>
    %40 = arith.cmpf oge, %39, %35 : vector<8x128xf32>
    %41 = arith.extui %40 : vector<8x128xi1> to vector<8x128xi32>
    %42 = arith.sitofp %41 : vector<8x128xi32> to vector<8x128xf32>
    %43 = arith.addf %36, %42 : vector<8x128xf32>
    %44 = vector.broadcast %38 : vector<1x128xf32> to vector<8x128xf32>
    %45 = arith.mulf %42, %44 : vector<8x128xf32>
    %46 = arith.addf %37, %45 : vector<8x128xf32>
    %47 = vector.extract_strided_slice %35 {offsets = [1, 0], sizes = [1, 128], strides = [1, 1]} : vector<8x128xf32> to vector<1x128xf32>
    %48 = vector.broadcast %47 : vector<1x128xf32> to vector<8x128xf32>
    %49 = arith.cmpf oge, %48, %35 : vector<8x128xf32>
    %50 = arith.extui %49 : vector<8x128xi1> to vector<8x128xi32>
    %51 = arith.sitofp %50 : vector<8x128xi32> to vector<8x128xf32>
    %52 = arith.addf %43, %51 : vector<8x128xf32>
    %53 = vector.broadcast %47 : vector<1x128xf32> to vector<8x128xf32>
    %54 = arith.mulf %51, %53 : vector<8x128xf32>
    %55 = arith.addf %46, %54 : vector<8x128xf32>
    %56 = vector.extract_strided_slice %35 {offsets = [2, 0], sizes = [1, 128], strides = [1, 1]} : vector<8x128xf32> to vector<1x128xf32>
    %57 = vector.broadcast %56 : vector<1x128xf32> to vector<8x128xf32>
    %58 = arith.cmpf oge, %57, %35 : vector<8x128xf32>
    %59 = arith.extui %58 : vector<8x128xi1> to vector<8x128xi32>
    %60 = arith.sitofp %59 : vector<8x128xi32> to vector<8x128xf32>
    %61 = arith.addf %52, %60 : vector<8x128xf32>
    %62 = vector.broadcast %56 : vector<1x128xf32> to vector<8x128xf32>
    %63 = arith.mulf %60, %62 : vector<8x128xf32>
    %64 = arith.addf %55, %63 : vector<8x128xf32>
    %65 = vector.extract_strided_slice %35 {offsets = [3, 0], sizes = [1, 128], strides = [1, 1]} : vector<8x128xf32> to vector<1x128xf32>
    %66 = vector.broadcast %65 : vector<1x128xf32> to vector<8x128xf32>
    %67 = arith.cmpf oge, %66, %35 : vector<8x128xf32>
    %68 = arith.extui %67 : vector<8x128xi1> to vector<8x128xi32>
    %69 = arith.sitofp %68 : vector<8x128xi32> to vector<8x128xf32>
    %70 = arith.addf %61, %69 : vector<8x128xf32>
    %71 = vector.broadcast %65 : vector<1x128xf32> to vector<8x128xf32>
    %72 = arith.mulf %69, %71 : vector<8x128xf32>
    %73 = arith.addf %64, %72 : vector<8x128xf32>
    %74 = vector.extract_strided_slice %35 {offsets = [4, 0], sizes = [1, 128], strides = [1, 1]} : vector<8x128xf32> to vector<1x128xf32>
    %75 = vector.broadcast %74 : vector<1x128xf32> to vector<8x128xf32>
    %76 = arith.cmpf oge, %75, %35 : vector<8x128xf32>
    %77 = arith.extui %76 : vector<8x128xi1> to vector<8x128xi32>
    %78 = arith.sitofp %77 : vector<8x128xi32> to vector<8x128xf32>
    %79 = arith.addf %70, %78 : vector<8x128xf32>
    %80 = vector.broadcast %74 : vector<1x128xf32> to vector<8x128xf32>
    %81 = arith.mulf %78, %80 : vector<8x128xf32>
    %82 = arith.addf %73, %81 : vector<8x128xf32>
    %83 = vector.extract_strided_slice %35 {offsets = [5, 0], sizes = [1, 128], strides = [1, 1]} : vector<8x128xf32> to vector<1x128xf32>
    %84 = vector.broadcast %83 : vector<1x128xf32> to vector<8x128xf32>
    %85 = arith.cmpf oge, %84, %35 : vector<8x128xf32>
    %86 = arith.extui %85 : vector<8x128xi1> to vector<8x128xi32>
    %87 = arith.sitofp %86 : vector<8x128xi32> to vector<8x128xf32>
    %88 = arith.addf %79, %87 : vector<8x128xf32>
    %89 = vector.broadcast %83 : vector<1x128xf32> to vector<8x128xf32>
    %90 = arith.mulf %87, %89 : vector<8x128xf32>
    %91 = arith.addf %82, %90 : vector<8x128xf32>
    %92 = vector.extract_strided_slice %35 {offsets = [6, 0], sizes = [1, 128], strides = [1, 1]} : vector<8x128xf32> to vector<1x128xf32>
    %93 = vector.broadcast %92 : vector<1x128xf32> to vector<8x128xf32>
    %94 = arith.cmpf oge, %93, %35 : vector<8x128xf32>
    %95 = arith.extui %94 : vector<8x128xi1> to vector<8x128xi32>
    %96 = arith.sitofp %95 : vector<8x128xi32> to vector<8x128xf32>
    %97 = arith.addf %88, %96 : vector<8x128xf32>
    %98 = vector.broadcast %92 : vector<1x128xf32> to vector<8x128xf32>
    %99 = arith.mulf %96, %98 : vector<8x128xf32>
    %100 = arith.addf %91, %99 : vector<8x128xf32>
    %101 = vector.extract_strided_slice %35 {offsets = [7, 0], sizes = [1, 128], strides = [1, 1]} : vector<8x128xf32> to vector<1x128xf32>
    %102 = vector.broadcast %101 : vector<1x128xf32> to vector<8x128xf32>
    %103 = arith.cmpf oge, %102, %35 : vector<8x128xf32>
    %104 = arith.extui %103 : vector<8x128xi1> to vector<8x128xi32>
    %105 = arith.sitofp %104 : vector<8x128xi32> to vector<8x128xf32>
    %106 = arith.addf %97, %105 : vector<8x128xf32>
    %107 = vector.broadcast %101 : vector<1x128xf32> to vector<8x128xf32>
    %108 = arith.mulf %105, %107 : vector<8x128xf32>
    %109 = arith.addf %100, %108 : vector<8x128xf32>
    %110 = arith.mulf %106, %35 : vector<8x128xf32>
    %cst_22 = arith.constant 1.000000e+00 : f32
    %111 = vector.broadcast %cst_22 : f32 to vector<8x128xf32>
    %112 = arith.addf %111, %110 : vector<8x128xf32>
    %113 = arith.cmpf ogt, %112, %109 : vector<8x128xf32>
    %114 = arith.extui %113 : vector<8x128xi1> to vector<8x128xi32>
    %115 = arith.sitofp %114 : vector<8x128xi32> to vector<8x128xf32>
    %cst_23 = arith.constant dense<0.000000e+00> : vector<128xf32>
    %116 = vector.multi_reduction <add>, %115, %cst_23 [0] : vector<8x128xf32> to vector<128xf32>
    %117 = vector.shape_cast %116 : vector<128xf32> to vector<1x128xf32>
    %118 = arith.mulf %35, %115 : vector<8x128xf32>
    %cst_24 = arith.constant dense<0.000000e+00> : vector<128xf32>
    %119 = vector.multi_reduction <add>, %118, %cst_24 [0] : vector<8x128xf32> to vector<128xf32>
    %120 = vector.shape_cast %119 : vector<128xf32> to vector<1x128xf32>
    %cst_25 = arith.constant 1.000000e+00 : f32
    %121 = vector.broadcast %cst_25 : f32 to vector<1x128xf32>
    %122 = arith.subf %120, %121 : vector<1x128xf32>
    %123 = arith.divf %122, %117 : vector<1x128xf32>
    %124 = vector.broadcast %123 : vector<1x128xf32> to vector<8x128xf32>
    %125 = arith.subf %35, %124 : vector<8x128xf32>
    %cst_26 = arith.constant 0.000000e+00 : f32
    %126 = vector.broadcast %cst_26 : f32 to vector<8x128xf32>
    %127 = arith.maximumf %125, %126 : vector<8x128xf32>
    %c0_27 = arith.constant 0 : index
    %c0_28 = arith.constant 0 : index
    %128 = vector.load %arg7[%c0_27, %c0_28] : memref<8x128xf32, #tpu.memory_space<vmem>>, vector<8x128xf32>
    tpu.vector_store %arg7[%c0_27, %c0_28], %127 {strides = array<i32>} : memref<8x128xf32, #tpu.memory_space<vmem>>, vector<8x128xf32>,
    return
  }
  func.func @transform_0(%arg0: i32, %arg1: i32) -> (i32, i32) {
    %c0_i32 = arith.constant 0 : i32
    %c0_i32_0 = arith.constant 0 : i32
    return %c0_i32, %arg0 : i32, i32
  }
  func.func @transform_1(%arg0: i32, %arg1: i32) -> (i32, i32) {
    %c0_i32 = arith.constant 0 : i32
    return %arg0, %arg1 : i32, i32
  }
  func.func @transform_2(%arg0: i32, %arg1: i32) -> (i32, i32) {
    %c0_i32 = arith.constant 0 : i32
    %c0_i32_0 = arith.constant 0 : i32
    return %c0_i32, %arg1 : i32, i32
  }
  func.func @transform_3(%arg0: i32, %arg1: i32) -> (i32, i32) {
    %c0_i32 = arith.constant 0 : i32
    %c0_i32_0 = arith.constant 0 : i32
    %c0_i32_1 = arith.constant 0 : i32
    return %c0_i32, %c0_i32_0 : i32, i32
  }
  func.func @transform_4(%arg0: i32, %arg1: i32) -> (i32, i32) {
    %c0_i32 = arith.constant 0 : i32
    %c0_i32_0 = arith.constant 0 : i32
    %c0_i32_1 = arith.constant 0 : i32
    return %c0_i32, %c0_i32_0 : i32, i32
  }
  func.func @transform_5(%arg0: i32, %arg1: i32) -> (i32, i32) {
    %c0_i32 = arith.constant 0 : i32
    %c0_i32_0 = arith.constant 0 : i32
    return %c0_i32, %arg0 : i32, i32
  }
}

</mosaic_0001>

<bundles_post_ra>
// kernel: tpu_custom_call.1
= control target key start
LH: loop header
LB: loop body
LE: loop exit
PB: predicated region body
PF: predicated region fallthrough
CT: control target
= control target key end

     0   :  { %10 = vsyncpa [#allocation4], 0  ;;  %s1069_s0 = inlined_call_operand.vmem [shape: f32[8,512], index: 0, kind: input, shape index: {}]   ;;  %s1070_s1 = inlined_call_operand.vmem [shape: bf16[512,64], index: 1, kind: input, shape index: {}]   ;;  %s1071_s2 = inlined_call_operand.vmem [shape: bf16[8,64], index: 2, kind: input, shape index: {}]   ;;  %s1072_s3 = inlined_call_operand.vmem [shape: f32[8,1], index: 3, kind: input, shape index: {}]   ;;  %s1073_s4 = inlined_call_operand.vmem [shape: f32[8,1], index: 4, kind: input, shape index: {}]   ;;  %s1074_s5 = inlined_call_operand.hbm [shape: f32[8,512], index: 5, kind: output, shape index: {}]  }
   0x1   :  { %12 = vsyncpa [#allocation4 + $0x1], 0  ;;  %s909_s18 = smov 0   ;;  %s911_s19 = smov 0  }
   0x2   :  { %s913_s20 = smov 0   ;;  %s915_s21 = smov 0  }
   0x3   :  { %s917_s22 = smov 0   ;;  %s919_s23 = smov 0  }
   0x4 LB: > { %s663_s24 = sadd.s32 4294967295, %s873_s23   ;;  %s664_s25 = sadd.s32 4294967294, %s873_s23   ;;  %s873_s23 = sphi %s919_s23, %s18_s23   ;;  %s869_s22 = sphi %s917_s22, %s1081_s22   ;;  %s865_s21 = sphi %s915_s21, %s1080_s21   ;;  %s861_s20 = sphi %s913_s20, %s1079_s20   ;;  %s857_s19 = sphi %s911_s19, %s1078_s19   ;;  %s853_s18 = sphi %s909_s18, %s1077_s18  }
   0x5   : > { %s30_s26 = sadd.s32 1, %s869_s22  ;;  %s159_s27 = sadd.s32 1, %s861_s20 }
   0x6   : > { %p32_p0 = scmp.ge.s32.totalorder %s30_s26, 4  ;;  %p169_p1 = scmp.ne.s32.totalorder %s861_s20, %s857_s19 }
   0x7   : > { %p170_p2 = scmp.eq.s32.totalorder %s663_s24, 3  ;;  %p175_p3 = scmp.ne.s32.totalorder %s857_s19, %s853_s18 }
   0x8   : > { %s1083_s26 = smov (%p32_p0, %s30_s26), 0  ;;  %p176_p5 = scmp.eq.s32.totalorder %s664_s25, 3 }
   0x9   : > { %p949_p4 = por %p170_p2, %p169_p1  ;;  %s156_s29 = ssub.s32 %s869_s22, %s1083_s26 }
   0xa   : > { %p668_p6 = scmp.ge.s32.totalorder %s873_s23, 1  ;;  %p157_p7 = scmp.eq.s32.totalorder %s156_s29, 0 }
   0xb   : > { %p956_p8 = por %p176_p5, %p175_p3  ;;  %p226_p9 = scmp.lt.s32.totalorder %s873_s23, 5 }
   0xc   : > { %s962_s6 = scalar_select %p157_p7, %s861_s20, %s159_s27  }
   0xd   : > { %p227_p10 = pnand %p668_p6, %p226_p9 }
   0xe   : > { %s671_s7 = sshll.u32 (!%p227_p10), %s865_s21, 4  ;;  %p265_p12 = scmp.lt.s32.totalorder (!%p227_p10), %s865_s21, 3 }
   0xf   : > { %230 = sbr.rel (%p227_p10) target bundleno = 662 (0x296), region = 40  ;;  %p270_p11 = scmp.lt.s32.totalorder (!%p227_p10), %s671_s7, 63 }
  0x10   : > { %s693_s10 = sshll.u32 (!%p227_p10), %s865_s21, 7 }
  0x11   : > { %s564_s15 = scalar_lea.hbm (!%p227_p10), %s1074_s5, %s693_s10 }
  0x14   : > { %v875_v0 = vmov 0.0   ;;  %vm876_vm0 = vmmov 0   ;;  %s1085_s7 = smov (!%p270_p11, %s671_s7), 63  ;;  %vm340_vm1 = vcmask 523264   ;;  %v283_v17 = vld [vmem:[%s1071_s2] sm:$0xf]  ;;  %v448_v45 = vlaneseq }
  0x15   : > { %705 = vmatprep.subr.bf16.mxu0 %v875_v0  ;;  %721 = vmatprep.mubr.msk.bf16.mxu0 %vm876_vm0, %v875_v0  ;;  %s672_s8 = sshll.u32 %s1085_s7, 2  ;;  %v877_v23 = vmov 0   ;;  %v420_v32 = vld [vmem:[%s1072_s3] sm:$0xff] }
  0x16   : > { %s276_s11 = scalar_lea.vmem %s1070_s1, %s672_s8  ;;  %783 = vset.pattern.permute.xlu1 %v877_v23  ;;  %784 = vset.pattern.permute.xlu0 %v877_v23  ;;  %v424_v35 = vld [vmem:[%s1073_s4] sm:$0xff]  ;;  %v449_v48 = vshrl.u32 %v448_v45, 7  ;;  %s262_s8 = sand.u32 1, %s857_s19  }
  0x17   : > { %v785_v1 = vld [vmem:[%s276_s11 + $0x38] sm:$0xff]   ;;  %v786_v3 = vld [vmem:[%s276_s11 + $0x30] sm:$0xff]   ;;  %v787_v5 = vld [vmem:[%s276_s11 + $0x28] sm:$0xff]   ;;  %s266_s24 = scalar_select %p265_p12, %s865_s21, 3 }
  0x18   : > { %v366_v2 = vsel %vm340_vm1, %v785_v1, 0  ;;  %v363_v4 = vsel %vm340_vm1, %v786_v3, 0  ;;  %v360_v6 = vsel %vm340_vm1, %v787_v5, 0  ;;  %v788_v7 = vld [vmem:[%s276_s11 + $0x20] sm:$0xff]   ;;  %v789_v9 = vld [vmem:[%s276_s11 + $0x18] sm:$0xff]   ;;  %v790_v11 = vld [vmem:[%s276_s11 + $0x10] sm:$0xff]  }
  0x19   : > { %706 = vmatpush3.bf16.xpose.msra.mxu0 %v366_v2  ;;  %v357_v8 = vsel %vm340_vm1, %v788_v7, 0  ;;  %v354_v10 = vsel %vm340_vm1, %v789_v9, 0  ;;  %v351_v12 = vsel %vm340_vm1, %v790_v11, 0  ;;  %v791_v13 = vld [vmem:[%s276_s11 + $0x8] sm:$0xff]   ;;  %v792_v15 = vld [vmem:[%s276_s11] sm:$0xff]   ;;  %s670_s25 = sshll.u32 %s266_s24, 3 }
  0x1a   : > { %707 = vmatprep.subr.bf16.mxu0 %v875_v0  ;;  %v348_v14 = vsel %vm340_vm1, %v791_v13, 0  ;;  %v345_v16 = vsel %vm340_vm1, %v792_v15, 0  ;;  %s268_s7 = scalar_lea.vmem %s1069_s0, %s670_s25  ;;  %v450_v51 = vsub.s32 0, %v449_v48  ;;  %v460_v53 = vsub.s32 1, %v449_v48  ;;  %s669_s9 = sshll.u32 %s262_s8, 3 }
  0x1b   : > { %v439_v41 = vld [vmem:[%s268_s7] sm:$0xff]  ;;  %v470_v54 = vsub.s32 2, %v449_v48  ;;  %v480_v55 = vsub.s32 3, %v449_v48  ;;  %v490_v56 = vsub.s32 4, %v449_v48  ;;  %v500_v57 = vsub.s32 5, %v449_v48  ;;  %s264_s11 = scalar_lea.vmem [#allocation3], %s669_s9 }
  0x1c   : > { %v510_v59 = vsub.s32 6, %v449_v48  ;;  %s566_s12 = sshll.u32 %s264_s11, 4  ;;  %s553_s16 = scalar_lea.sflag [#allocation4], %s262_s8  ;;  %s567_s12 = int_to_ptr.vmem [resolvable:$true] %s566_s12 }
  0x1d   : > { %s797_s17 = scalar_lea.vmem %s567_s12, 128  ;;  %s878_s24 = smov [#allocation3]  }
  0x1e   : > { %p798_p13 = scmp.ne.s32.totalorder %s567_s12, %s797_s17  ;;  %s801_s25 = sshll.u32 %s878_s24, 4  ;;  %s802_s25 = int_to_ptr.vmem [resolvable:$false] %s801_s25 }
  0x1f   : > { %s803_s21 = scalar_lea.vmem %s802_s25, 256  ;;  %p804_p2 = scmp.lt.s32.totalorder %s567_s12, %s802_s25 }
  0x20   : > { %p799_p0 = pnand %p798_p13, %p949_p4  ;;  %p805_p3 = scmp.lt.s32.totalorder %s803_s21, %s797_s17 }
  0x21   : > { %708 = vmatpush3.bf16.xpose.msra.mxu0 %v363_v4 }
  0x22   : > { %709 = vmatprep.subr.bf16.mxu0 %v875_v0  ;;  %p800_p1 = pneg %p799_p0  ;;  %p806_p5 = por %p805_p3, %p804_p2 }
  0x24   : > { %p807_p6 = pnand %p806_p5, %p800_p1 }
  0x29   : > { %710 = vmatpush3.bf16.xpose.msra.mxu0 %v360_v6  ;;  %v520_v6 = vsub.s32 7, %v449_v48 }
  0x2a   : > { %711 = vmatprep.subr.bf16.mxu0 %v875_v0 }
  0x31   : > { %712 = vmatpush3.bf16.xpose.msra.mxu0 %v357_v8 }
  0x32   : > { %713 = vmatprep.subr.bf16.mxu0 %v875_v0 }
  0x39   : > { %714 = vmatpush3.bf16.xpose.msra.mxu0 %v354_v10 }
  0x3a   : > { %715 = vmatprep.subr.bf16.mxu0 %v875_v0 }
  0x41   : > { %716 = vmatpush3.bf16.xpose.msra.mxu0 %v351_v12 }
  0x42   : > { %717 = vmatprep.subr.bf16.mxu0 %v875_v0 }
  0x49   : > { %718 = vmatpush3.bf16.xpose.msra.mxu0 %v348_v14 }
  0x4a   : > { %719 = vmatprep.subr.bf16.mxu0 %v875_v0 }
  0x51   : > { %720 = vmatpush3.bf16.xpose.msra.mxu0 %v345_v16 }
  0x58   : > { %722 = vmatmul.mubr.msk.bf16.vlgmr.msra.gmra.mxu0 %vm340_vm1, %v283_v17 }
 0x118   : > { %v402_v18 = vpop.f32.mrf.mxu0 }
 0x119   : > { %410 = vadd.xlane.f32.xlu0 %v402_v18  ;;  %v413_v20 = vmul.f32 %v402_v18, %v402_v18 }
 0x11a   : > { %v723_v19 = vpop.f32.mrf.mxu0 }
 0x11c   : > { %v405_v21 = vpop.f32.mrf.mxu0 }
 0x11d   : > { %414 = vadd.xlane.f32.xlu0 %v413_v20 }
 0x11e   : > { %v724_v22 = vpop.f32.mrf.mxu0 }
 0x1a2   : > { %v411_v24 = vpop.xlane.xlu0 %410 }
 0x1a3   : > { %v412_v25 = vmul.f32 0.0078125, %v411_v24 }
 0x1a5   : > { %v417_v27 = vmul.f32 %v412_v25, %v412_v25 }
 0x1a6   : > { %v415_v26 = vpop.xlane.xlu0 %414 }
 0x1a7   : > { %v416_v28 = vmul.f32 0.0078125, %v415_v26 }
 0x1a9   : > { %v418_v29 = vsub.f32 %v416_v28, %v417_v27 }
 0x1ab   : > { %v419_v30 = vmax.f32 %v418_v29, 0.0 }
 0x1ad   : > { %v421_v31 = vadd.f32 1e-05, %v419_v30 }
 0x1af   : > { %793 = vrsqrt.f32 %v421_v31 }
 0x1bc   : > { %v794_v33 = vpop.eup %793 }
 0x1bd   : > { %v423_v34 = vmul.f32 %v794_v33, %v420_v32 }
 0x1bf   : > { %429 = vperm.xlu1 %783, %v423_v34   ;;  %v425_v36 = vmul.f32 %v423_v34, %v412_v25 }
 0x1c1   : > { %v426_v37 = vsub.f32 %v424_v35, %v425_v36 }
 0x1c3   : > { %435 = vperm.xlu1 %783, %v426_v37  }
 0x23a   : > { %v430_v38 = vpop.permute.xlu1 %429 }
 0x23b   : > { %v432_v39 = vmul.f32 %v430_v38, %v402_v18 }
 0x23e   : > { %v436_v40 = vpop.permute.xlu1 %435 }
 0x23f   : > { %v438_v42 = vadd.f32 %v436_v40, %v432_v39 }
 0x241   : > { %v440_v43 = vmul.f32 %v439_v41, %v438_v42 }
 0x243   : > { %v441_v44 = vrot.slane %v440_v43, 4 }
 0x245   : > { %v442_v46 = vmax.f32 %v440_v43, %v441_v44 }
 0x247   : > { %v443_v47 = vrot.slane %v442_v46, 2 }
 0x249   : > { %v444_v49 = vmax.f32 %v442_v46, %v443_v47 }
 0x24b   : > { %v445_v50 = vrot.slane %v444_v49, 1 }
 0x24d   : > { %v446_v52 = vmax.f32 %v444_v49, %v445_v50 }
 0x24f   : > { %v1000_v58 = vsub.f32 %v440_v43, %v446_v52 }
 0x251   : > { %v451_v60 = vrot.slane %v1000_v58, %v450_v51  ;;  %v461_v61 = vrot.slane %v1000_v58, %v460_v53  ;;  %v471_v62 = vrot.slane %v1000_v58, %v470_v54  ;;  %v481_v63 = vrot.slane %v1000_v58, %v480_v55 }
 0x252   : > { %v491_v1 = vrot.slane %v1000_v58, %v490_v56  ;;  %v501_v2 = vrot.slane %v1000_v58, %v500_v57  ;;  %v511_v10 = vrot.slane %v1000_v58, %v510_v59  ;;  %v521_v16 = vrot.slane %v1000_v58, %v520_v6 }
 0x253   : > { %vm452_vm2 = vcmp.ge.f32.partialorder %v451_v60, %v1000_v58  ;;  %vm462_vm3 = vcmp.ge.f32.partialorder %v461_v61, %v1000_v58  ;;  %vm472_vm4 = vcmp.ge.f32.partialorder %v471_v62, %v1000_v58  ;;  %vm482_vm5 = vcmp.ge.f32.partialorder %v481_v63, %v1000_v58 }
 0x254   : > { %v682_v3 = vsel %vm452_vm2, 1.0, %v875_v0  ;;  %v683_v4 = vsel %vm462_vm3, 1.0, %v875_v0  ;;  %v684_v5 = vsel %vm472_vm4, 1.0, %v875_v0  ;;  %v685_v11 = vsel %vm482_vm5, 1.0, %v875_v0 }
 0x255   : > { %v456_v7 = vmul.f32 %v682_v3, %v451_v60  ;;  %v465_v8 = vadd.f32 %v683_v4, %v682_v3  ;;  %v466_v9 = vmul.f32 %v683_v4, %v461_v61  ;;  %vm492_vm6 = vcmp.ge.f32.partialorder %v491_v1, %v1000_v58 }
 0x256   : > { %v476_v14 = vmul.f32 %v684_v5, %v471_v62  ;;  %vm502_vm7 = vcmp.ge.f32.partialorder %v501_v2, %v1000_v58  ;;  %v686_v15 = vsel %vm492_vm6, 1.0, %v875_v0  ;;  %v486_v19 = vmul.f32 %v685_v11, %v481_v63 }
 0x257   : > { %v467_v12 = vadd.f32 %v466_v9, %v456_v7  ;;  %v475_v13 = vadd.f32 %v684_v5, %v465_v8  ;;  %vm512_vm8 = vcmp.ge.f32.partialorder %v511_v10, %v1000_v58  ;;  %v687_v20 = vsel %vm502_vm7, 1.0, %v875_v0 }
 0x258   : > { %v496_v23 = vmul.f32 %v686_v15, %v491_v1  ;;  %v688_v24 = vsel %vm512_vm8, 1.0, %v875_v0  ;;  %v506_v27 = vmul.f32 %v687_v20, %v501_v2  ;;  %vm522_vm9 = vcmp.ge.f32.partialorder %v521_v16, %v1000_v58 }
 0x259   : > { %v477_v17 = vadd.f32 %v476_v14, %v467_v12  ;;  %v485_v18 = vadd.f32 %v685_v11, %v475_v13  ;;  %v516_v30 = vmul.f32 %v688_v24, %v511_v10  ;;  %v689_v31 = vsel %vm522_vm9, 1.0, %v875_v0 }
 0x25a   : > { %v526_v34 = vmul.f32 %v689_v31, %v521_v16 }
 0x25b   : > { %v487_v21 = vadd.f32 %v486_v19, %v477_v17  ;;  %v495_v22 = vadd.f32 %v686_v15, %v485_v18 }
 0x25d   : > { %v497_v25 = vadd.f32 %v496_v23, %v487_v21  ;;  %v505_v26 = vadd.f32 %v687_v20, %v495_v22 }
 0x25f   : > { %v507_v28 = vadd.f32 %v506_v27, %v497_v25  ;;  %v515_v29 = vadd.f32 %v688_v24, %v505_v26 }
 0x261   : > { %v517_v32 = vadd.f32 %v516_v30, %v507_v28  ;;  %v525_v33 = vadd.f32 %v689_v31, %v515_v29 }
 0x263   : > { %v528_v35 = vmul.f32 %v525_v33, %v1000_v58  ;;  %v527_v36 = vadd.f32 %v526_v34, %v517_v32 }
 0x265   : > { %v529_v37 = vadd.f32 1.0, %v528_v35 }
 0x267   : > { %vm530_vm10 = vcmp.gt.f32.partialorder %v529_v37, %v527_v36 }
 0x268   : > { %v690_v38 = vsel %vm530_vm10, 1.0, %v875_v0 }
 0x269   : > { %v533_v39 = vrot.slane %v690_v38, 4  ;;  %v539_v40 = vmul.f32 %v690_v38, %v1000_v58 }
 0x26b   : > { %v534_v41 = vadd.f32 %v690_v38, %v533_v39  ;;  %v540_v42 = vrot.slane %v539_v40, 4 }
 0x26d   : > { %v535_v43 = vrot.slane %v534_v41, 2  ;;  %v541_v44 = vadd.f32 %v540_v42, %v539_v40 }
 0x26f   : > { %v536_v45 = vadd.f32 %v535_v43, %v534_v41  ;;  %v542_v47 = vrot.slane %v541_v44, 2 }
 0x271   : > { %v537_v46 = vrot.slane %v536_v45, 1  ;;  %v543_v49 = vadd.f32 %v542_v47, %v541_v44 }
 0x273   : > { %v538_v48 = vadd.f32 %v537_v46, %v536_v45  ;;  %v544_v50 = vrot.slane %v543_v49, 1 }
 0x275   : > { %795 = vrcp.f32 %v538_v48  ;;  %v545_v51 = vadd.f32 %v544_v50, %v543_v49 }
 0x277   : > { %v691_v0 = vadd.f32 -1.0, %v545_v51 }
 0x282   : > { %v796_v52 = vpop.eup %795 }
 0x283   : > { %v548_v53 = vmul.f32 %v796_v52, %v691_v0 }
 0x285   : > { %v549_v54 = vsub.f32 %v1000_v58, %v548_v53 }
 0x287   : > { %v550_v55 = vmax.f32 %v549_v54, 0.0 }
 0x289   : > { %551 = vst [vmem:[%s264_s11] sm:$0xff] %v550_v55 }
 0x28a   : > { %810 = shalt.err (!%p807_p6)
}
 0x28b   : > { %s811_s27 = scalar_lea.hbm %s564_s15, 128  ;;  %s815_s8 = scalar_lea.hbm %s1074_s5, 512 }
 0x28c   : > { %p812_p7 = scmp.ne.s32.totalorder %s564_s15, %s811_s27  ;;  %p816_p11 = scmp.lt.s32.totalorder %s564_s15, %s1074_s5 }
 0x28d   : > { %p817_p12 = scmp.lt.s32.totalorder %s815_s8, %s811_s27 }
 0x28e   : > { %p813_p9 = pnand %p812_p7, %p949_p4 }
 0x28f   : > { %p818_p13 = por %p817_p12, %p816_p11 }
 0x290   : > { %p814_p10 = pneg %p813_p9 }
 0x292   : > { %p819_p0 = pnand %p818_p13, %p814_p10 }
 0x294   : > { %822 = shalt.err (!%p819_p0)
}
 0x295   : > { %725 = dma.vmem_to_hbm [thread:$0]  (%p949_p4), %s567_s12, 128, %s564_s15, %s553_s16  }
 0x296 PF: > { %p731_p1 = scmp.ge.s32.totalorder %s873_s23, 2  ;;  %s578_s11 = sand.u32 1, %s853_s18  }
 0x297   : > { %s579_s13 = scalar_lea.sflag [#allocation4], %s578_s11 }
 0x298   : > { %p728_p2 = pnand %p731_p1, %p956_p8 }
 0x29a   : > { %p729_p3 = pneg %p728_p2 }
 0x29c   : > { %848 = dma.done.wait (%p729_p3), %s579_s13, 128  }
 0x29d   : > { %850 = vsyncadd (%p729_p3), %s579_s13, 4294967168  ;;  %s18_s23 = sadd.s32 1, %s873_s23   ;;  %s1077_s18 = smov %s857_s19 }
 0x29e   : > { %p15_p5 = scmp.ge.s32.totalorder %s18_s23, 6   ;;  %s1078_s19 = smov %s861_s20 }
 0x29f   : > { %s1079_s20 = smov %s962_s6  ;;  %s1080_s21 = smov %s869_s22 }
 0x2a0   : > { %s1081_s22 = smov %s1083_s26  ;;  %17 = sbr.rel (!%p15_p5) target bundleno = 4 (0x4), region = 81 }
 0x2a5   :  { %584 = vsyncpa [#allocation4], 1 }
 0x2a6   :  { %586 = vsyncpa [#allocation4 + $0x1], 1 }

</bundles_post_ra>
